<compile_context>
chip_gen: v7x
topology: tpu7x:2x2x1
jax: 0.10.0
libtpu: 0.0.40
codegen_flags: <defaults>
</compile_context>

<pallas_src>
import functools
import math

import jax
import jax.numpy as jnp
import numpy as np
from jax.experimental import pallas as pl
from jax.experimental.pallas import tpu as pltpu

_LANES = 128


def _red2(op, x):
    """(S, L) -> (1, 1): lane reduce then sublane reduce (standard lowerings)."""
    return op(op(x, axis=-1, keepdims=True), axis=-2, keepdims=True)


def _fps_kernel(start_ref, pos_ref, out_ref, *, n_valid, scalar_gather):
    """One batch segment per grid step.

    start_ref : SMEM (B,)      i32 -- first-point index per segment (scalar prefetch)
    pos_ref   : VMEM (D, S, L) f32 -- coordinate planes, points (sublane, lane) dense
    out_ref   : VMEM (M, 1)    i32 -- selected local indices
    """
    D, S, L = pos_ref.shape
    M = out_ref.shape[0]
    b = pl.program_id(0)
    n_pad = S * L
    shift = L.bit_length() - 1            # L == 128 (power of two)

    # linear point index of every (sublane, lane) slot -- loop invariant
    idx2d = (jax.lax.broadcasted_iota(jnp.int32, (S, L), 0) * L
             + jax.lax.broadcasted_iota(jnp.int32, (S, L), 1))
    lane_iota = jax.lax.broadcasted_iota(jnp.int32, (1, L), 1)

    # padding slots get -inf min-distance so they can never become farthest
    mind0 = jnp.where(idx2d < n_valid,
                      jnp.float32(jnp.inf), jnp.float32(-jnp.inf))

    if scalar_gather:
        cur0 = start_ref[b]                                    # i32 scalar
    else:
        cur0 = jnp.full((1, 1), start_ref[b], dtype=jnp.int32)

    def body(k, carry):
        cur, mind = carry

        if scalar_gather:
            # record current selection (tiny dynamic-sublane store)
            out_ref[pl.ds(k, 1), :] = jnp.broadcast_to(cur, (1, 1))
            # gather the selected point's coords: one dynamic row load + a
            # 128-lane masked reduce per coordinate (O(L), not O(S*L)).
            s0 = cur >> shift
            l0 = cur & (L - 1)
            lmask = lane_iota == l0                            # (1, L)
            coords = []
            for d in range(D):
                row = pos_ref.at[d][pl.ds(s0, 1), :]           # (1, L)
                coords.append(jnp.sum(jnp.where(lmask, row, 0.0),
                                      axis=-1, keepdims=True))  # (1, 1)
        else:
            out_ref[pl.ds(k, 1), :] = cur
            sel = idx2d == cur                                 # exactly one slot
            coords = [None] * D

        # squared distance of every point to the currently selected point
        d2 = None
        for d in range(D):
            plane = pos_ref[d]                                 # (S, L)
            if scalar_gather:
                c = coords[d]
            else:
                # exact gather: mask has exactly one nonzero slot
                c = _red2(jnp.sum, jnp.where(sel, plane, 0.0))  # (1, 1)
            diff = plane - c
            sq = diff * diff
            d2 = sq if d2 is None else d2 + sq

        mind = jnp.minimum(mind, d2)

        # next farthest point = argmax of min-distance (smallest index on ties)
        mx = _red2(jnp.max, mind)                              # (1, 1)
        cand = jnp.where(mind == mx, idx2d, n_pad)             # i32
        nxt = _red2(jnp.min, cand)                             # (1, 1) i32
        if scalar_gather:
            nxt = nxt[0, 0]                                    # vector -> scalar
        return nxt, mind

    jax.lax.fori_loop(0, M, body, (cur0, mind0))


def _fps_call(pos_t, starts, *, m, n_valid, scalar_gather):
    """Invoke the Pallas kernel.  pos_t: (B, D, S, 128) f32, starts: (B,) i32."""
    B, D, S, L = pos_t.shape

    cp_kwargs = dict(dimension_semantics=("parallel",))
    # pos block (double-buffered) + mind/idx2d/temps spilled by the compiler
    vmem_est = 2 * D * S * L * 4 + 4 * S * L * 4 + 2 * m * 4
    if vmem_est > (8 << 20):
        cp_kwargs["vmem_limit_bytes"] = int(min(2 * vmem_est, 100 << 20))

    return pl.pallas_call(
        functools.partial(_fps_kernel, n_valid=n_valid,
                          scalar_gather=scalar_gather),
        out_shape=jax.ShapeDtypeStruct((B, m, 1), jnp.int32),
        grid_spec=pltpu.PrefetchScalarGridSpec(
            num_scalar_prefetch=1,
            grid=(B,),
            in_specs=[pl.BlockSpec((None, D, S, L),
                                   lambda b, s: (b, 0, 0, 0))],
            out_specs=pl.BlockSpec((None, m, 1), lambda b, s: (b, 0, 0)),
        ),
        compiler_params=pltpu.CompilerParams(**cp_kwargs),
    )(starts, pos_t)


def fps_reference(pos_np, ptr, ratio, starts):
    """Pure numpy FPS matching the kernel's arithmetic and tie-breaking."""
    idx_all = []
    for b in range(len(ptr) - 1):
        s, e = int(ptr[b]), int(ptr[b + 1])
        n = e - s
        m = int(math.ceil(ratio * n))
        pts = pos_np[s:e].astype(np.float32)
        sel = np.empty(m, dtype=np.int64)
        cur = int(starts[b])
        mind = np.full(n, np.inf, dtype=np.float32)
        for k in range(m):
            sel[k] = cur + s
            d2 = np.sum((pts - pts[cur]) ** 2, axis=1).astype(np.float32)
            mind = np.minimum(mind, d2)
            mx = mind.max()
            cur = int(np.min(np.where(mind == mx, np.arange(n), n)))
        idx_all.append(sel)
    return np.concatenate(idx_all)


_SCALAR_GATHER_OK = None


def _scalar_gather_supported():
    """One-time probe: does the fast (scalar-index gather) variant lower and
    produce reference-exact results on this TPU / jax version?"""
    global _SCALAR_GATHER_OK
    if _SCALAR_GATHER_OK is None:
        try:
            n, d, m = 1280, 3, 8          # S = 10: crosses the 8-sublane tile
            pts = jax.random.normal(jax.random.PRNGKey(123), (n, d),
                                    dtype=jnp.float32)
            pos_t = pts.T.reshape(1, d, n // _LANES, _LANES)
            starts = jnp.zeros((1,), jnp.int32)
            out = _fps_call(pos_t, starts, m=m, n_valid=n, scalar_gather=True)
            got = np.asarray(jax.block_until_ready(out)).reshape(-1)
            ref = fps_reference(np.asarray(pts), [0, n], m / n, [0])
            _SCALAR_GATHER_OK = bool(np.array_equal(got, ref.astype(np.int32)))
        except Exception:
            _SCALAR_GATHER_OK = False
    return _SCALAR_GATHER_OK


def fps_pallas(pos, batch=None, *, ratio=0.5, random_first=False, key=None):
    """FPS over (N_total, D) points.

    Mirrors FPS_jit.forward(pos, batch): returns flat indices into `pos`
    (int32 here; the CUDA op returns int64), plus the per-segment start index.
    `batch` must describe contiguous, equal-size segments (or be None).
    """
    N_total, D = pos.shape
    if batch is None:
        B, N = 1, N_total
    else:
        batch_np = np.asarray(batch)
        B = int(batch_np.max()) + 1
        counts = np.bincount(batch_np, minlength=B)
        # TODO(synk): ragged per-batch segments (unequal sizes) not supported;
        # equal-size contiguous segments only.
        assert np.all(counts == counts[0]), "equal-size contiguous segments required"
        N = int(counts[0])
    offsets = jnp.arange(B, dtype=jnp.int32) * N
    M = int(math.ceil(ratio * N))         # number of samples per segment

    S = -(-N // _LANES)                   # ceil(N / 128)
    N_pad = S * _LANES

    pos_f = jnp.asarray(pos, jnp.float32).reshape(B, N, D)
    if N_pad != N:
        pos_f = jnp.pad(pos_f, ((0, 0), (0, N_pad - N), (0, 0)))
    # (B, D, S, 128): coord planes on a leading dim, points lane/sublane dense
    pos_t = pos_f.transpose(0, 2, 1).reshape(B, D, S, _LANES)

    if random_first:
        key = jax.random.PRNGKey(0) if key is None else key
        starts = jax.random.randint(key, (B,), 0, N, dtype=jnp.int32)
    else:
        starts = jnp.zeros((B,), jnp.int32)

    if _scalar_gather_supported():
        try:
            out = _fps_call(pos_t, starts, m=M, n_valid=N, scalar_gather=True)
        except Exception:
            out = _fps_call(pos_t, starts, m=M, n_valid=N, scalar_gather=False)
    else:
        out = _fps_call(pos_t, starts, m=M, n_valid=N, scalar_gather=False)

    idx = out.reshape(B, M) + offsets[:, None]
    return idx.reshape(B * M), starts


if __name__ == "__main__":
    ratio = 0.25
    D = 3

    # --- case 1: N multiple of 128, deterministic first point -------------
    B, N_per = 2, 128
    pos = jax.random.normal(jax.random.PRNGKey(0), (B * N_per, D),
                            dtype=jnp.float32)
    batch = np.repeat(np.arange(B), N_per)

    idx, starts = fps_pallas(pos, batch, ratio=ratio, random_first=False)
    idx = jax.block_until_ready(idx)

    pos_np = np.asarray(pos)
    ptr = np.concatenate([[0], np.cumsum(np.bincount(batch))])
    ref = fps_reference(pos_np, ptr, ratio, np.asarray(starts))
    assert idx.shape == ref.shape
    assert np.array_equal(np.asarray(idx), ref.astype(np.int32))

    # --- case 2: random first point (deterministic via fixed PRNG key) ----
    idx_r, starts_r = fps_pallas(pos, batch, ratio=ratio, random_first=True,
                                 key=jax.random.PRNGKey(1))
    idx_r = jax.block_until_ready(idx_r)
    ref_r = fps_reference(pos_np, ptr, ratio, np.asarray(starts_r))
    assert np.array_equal(np.asarray(idx_r), ref_r.astype(np.int32))

    # --- case 3: N not a multiple of 128 (exercises lane padding) ---------
    B2, N2 = 2, 96
    pos2 = jax.random.normal(jax.random.PRNGKey(2), (B2 * N2, D),
                             dtype=jnp.float32)
    batch2 = np.repeat(np.arange(B2), N2)
    idx2, starts2 = fps_pallas(pos2, batch2, ratio=ratio, random_first=False)
    idx2 = jax.block_until_ready(idx2)
    ptr2 = np.concatenate([[0], np.cumsum(np.bincount(batch2))])
    ref2 = fps_reference(np.asarray(pos2), ptr2, ratio, np.asarray(starts2))
    assert np.array_equal(np.asarray(idx2), ref2.astype(np.int32))

    # --- case 4: multi-sublane segments (N > 128, exercises S > 1) --------
    B3, N3 = 2, 384
    pos3 = jax.random.normal(jax.random.PRNGKey(3), (B3 * N3, D),
                             dtype=jnp.float32)
    batch3 = np.repeat(np.arange(B3), N3)
    idx3, starts3 = fps_pallas(pos3, batch3, ratio=ratio, random_first=False)
    idx3 = jax.block_until_ready(idx3)
    ptr3 = np.concatenate([[0], np.cumsum(np.bincount(batch3))])
    ref3 = fps_reference(np.asarray(pos3), ptr3, ratio, np.asarray(starts3))
    assert np.array_equal(np.asarray(idx3), ref3.astype(np.int32))

    print("KERNEL_OK")
</pallas_src>

<mosaic_0001>
module attributes {stable_mosaic.version = 11 : i64} {
  func.func @_fps_kernel(%arg0: i32, %arg1: memref<1xi32, #tpu.memory_space<smem>>, %arg2: memref<1x3x10x128xf32, #tpu.memory_space<vmem>>, %arg3: memref<1x8x1xi32, #tpu.memory_space<vmem>>) attributes {dimension_semantics = [#tpu.dimension_semantics<parallel>], iteration_bounds = array<i64: 1>, scalar_prefetch = 1 : i64, scratch_operands = 0 : i64, tpu.core_type = #tpu.core_type<tc>, window_params = [{transform_indices = @transform_0, window_bounds = array<i64: 1, 3, 10, 128>}, {transform_indices = @transform_1, window_bounds = array<i64: 1, 8, 1>}]} {
    %0 = tpu.iota {dimensions = array<i32: 0>} : vector<10x128xi32>
    %c128_i32 = arith.constant 128 : i32
    %1 = vector.broadcast %c128_i32 : i32 to vector<10x128xi32>
    %2 = arith.muli %0, %1 : vector<10x128xi32>
    %3 = tpu.iota {dimensions = array<i32: 1>} : vector<10x128xi32>
    %4 = arith.addi %2, %3 : vector<10x128xi32>
    %5 = tpu.iota {dimensions = array<i32: 1>} : vector<1x128xi32>
    %c1280_i32 = arith.constant 1280 : i32
    %6 = vector.broadcast %c1280_i32 : i32 to vector<10x128xi32>
    %7 = arith.cmpi slt, %4, %6 : vector<10x128xi32>
    %cst = arith.constant 0x7F800000 : f32
    %cst_0 = arith.constant 0xFF800000 : f32
    %8 = vector.broadcast %cst : f32 to vector<10x128xf32>
    %9 = vector.broadcast %cst_0 : f32 to vector<10x128xf32>
    %10 = arith.select %7, %8, %9 : vector<10x128xi1>, vector<10x128xf32>
    %11 = arith.index_cast %arg0 : i32 to index
    %12 = memref.load %arg1[%11] : memref<1xi32, #tpu.memory_space<smem>>
    %c0_i32 = arith.constant 0 : i32
    %c8_i32 = arith.constant 8 : i32
    %13 = arith.addi %c0_i32, %c8_i32 : i32
    %c1_i32 = arith.constant 1 : i32
    %14:2 = scf.for %arg4 = %c0_i32 to %13 step %c1_i32 iter_args(%arg5 = %12, %arg6 = %10) -> (i32, vector<10x128xf32>)  : i32 {
      %15 = vector.broadcast %arg5 : i32 to vector<1x1xi32>
      %c0 = arith.constant 0 : index
      %16 = arith.index_cast %arg4 : i32 to index
      %c0_2 = arith.constant 0 : index
      %17 = vector.load %arg3[%c0, %16, %c0_2] : memref<1x8x1xi32, #tpu.memory_space<vmem>>, vector<1x1x1xi32>
      %18 = vector.shape_cast %17 : vector<1x1x1xi32> to vector<1x1xi32>
      %19 = vector.shape_cast %15 : vector<1x1xi32> to vector<1x1x1xi32>
      tpu.vector_store %arg3[%c0, %16, %c0_2], %19 {strides = array<i32>} : memref<1x8x1xi32, #tpu.memory_space<vmem>>, vector<1x1x1xi32>,
      %c7_i32 = arith.constant 7 : i32
      %20 = arith.shrsi %arg5, %c7_i32 : i32
      %c127_i32 = arith.constant 127 : i32
      %21 = arith.andi %arg5, %c127_i32 : i32
      %22 = vector.broadcast %21 : i32 to vector<1x128xi32>
      %23 = arith.cmpi eq, %5, %22 : vector<1x128xi32>
      %c0_i32_3 = arith.constant 0 : i32
      %c0_i32_4 = arith.constant 0 : i32
      %c0_i32_5 = arith.constant 0 : i32
      %c0_i32_6 = arith.constant 0 : i32
      %24 = tpu.memref_slice %arg2[%c0_i32_3, %c0_i32_4, %c0_i32_5, %c0_i32_6] : memref<1x3x10x128xf32, #tpu.memory_space<vmem>> -> memref<1x1x10x128xf32, #tpu.memory_space<vmem>>
      %25 = tpu.memref_squeeze %24 : memref<1x1x10x128xf32, #tpu.memory_space<vmem>> -> memref<10x128xf32, #tpu.memory_space<vmem>>
      %26 = arith.index_cast %20 : i32 to index
      %c0_7 = arith.constant 0 : index
      %27 = vector.load %25[%26, %c0_7] : memref<10x128xf32, #tpu.memory_space<vmem>>, vector<1x128xf32>
      %cst_8 = arith.constant 0.000000e+00 : f32
      %28 = vector.broadcast %cst_8 : f32 to vector<1x128xf32>
      %29 = arith.select %23, %27, %28 : vector<1x128xi1>, vector<1x128xf32>
      %cst_9 = arith.constant dense<0.000000e+00> : vector<1xf32>
      %30 = vector.multi_reduction <add>, %29, %cst_9 [1] : vector<1x128xf32> to vector<1xf32>
      %31 = vector.shape_cast %30 : vector<1xf32> to vector<1x1xf32>
      %c0_i32_10 = arith.constant 0 : i32
      %c1_i32_11 = arith.constant 1 : i32
      %c0_i32_12 = arith.constant 0 : i32
      %c0_i32_13 = arith.constant 0 : i32
      %32 = tpu.memref_slice %arg2[%c0_i32_10, %c1_i32_11, %c0_i32_12, %c0_i32_13] : memref<1x3x10x128xf32, #tpu.memory_space<vmem>> -> memref<1x1x10x128xf32, #tpu.memory_space<vmem>>
      %33 = tpu.memref_squeeze %32 : memref<1x1x10x128xf32, #tpu.memory_space<vmem>> -> memref<10x128xf32, #tpu.memory_space<vmem>>
      %34 = arith.index_cast %20 : i32 to index
      %c0_14 = arith.constant 0 : index
      %35 = vector.load %33[%34, %c0_14] : memref<10x128xf32, #tpu.memory_space<vmem>>, vector<1x128xf32>
      %cst_15 = arith.constant 0.000000e+00 : f32
      %36 = vector.broadcast %cst_15 : f32 to vector<1x128xf32>
      %37 = arith.select %23, %35, %36 : vector<1x128xi1>, vector<1x128xf32>
      %cst_16 = arith.constant dense<0.000000e+00> : vector<1xf32>
      %38 = vector.multi_reduction <add>, %37, %cst_16 [1] : vector<1x128xf32> to vector<1xf32>
      %39 = vector.shape_cast %38 : vector<1xf32> to vector<1x1xf32>
      %c0_i32_17 = arith.constant 0 : i32
      %c2_i32 = arith.constant 2 : i32
      %c0_i32_18 = arith.constant 0 : i32
      %c0_i32_19 = arith.constant 0 : i32
      %40 = tpu.memref_slice %arg2[%c0_i32_17, %c2_i32, %c0_i32_18, %c0_i32_19] : memref<1x3x10x128xf32, #tpu.memory_space<vmem>> -> memref<1x1x10x128xf32, #tpu.memory_space<vmem>>
      %41 = tpu.memref_squeeze %40 : memref<1x1x10x128xf32, #tpu.memory_space<vmem>> -> memref<10x128xf32, #tpu.memory_space<vmem>>
      %42 = arith.index_cast %20 : i32 to index
      %c0_20 = arith.constant 0 : index
      %43 = vector.load %41[%42, %c0_20] : memref<10x128xf32, #tpu.memory_space<vmem>>, vector<1x128xf32>
      %cst_21 = arith.constant 0.000000e+00 : f32
      %44 = vector.broadcast %cst_21 : f32 to vector<1x128xf32>
      %45 = arith.select %23, %43, %44 : vector<1x128xi1>, vector<1x128xf32>
      %cst_22 = arith.constant dense<0.000000e+00> : vector<1xf32>
      %46 = vector.multi_reduction <add>, %45, %cst_22 [1] : vector<1x128xf32> to vector<1xf32>
      %47 = vector.shape_cast %46 : vector<1xf32> to vector<1x1xf32>
      %c0_23 = arith.constant 0 : index
      %c0_24 = arith.constant 0 : index
      %c0_25 = arith.constant 0 : index
      %c0_26 = arith.constant 0 : index
      %48 = vector.load %arg2[%c0_23, %c0_24, %c0_25, %c0_26] : memref<1x3x10x128xf32, #tpu.memory_space<vmem>>, vector<1x1x10x128xf32>
      %49 = vector.shape_cast %48 : vector<1x1x10x128xf32> to vector<10x128xf32>
      %50 = vector.broadcast %31 : vector<1x1xf32> to vector<10x128xf32>
      %51 = arith.subf %49, %50 : vector<10x128xf32>
      %52 = arith.mulf %51, %51 : vector<10x128xf32>
      %c0_27 = arith.constant 0 : index
      %c1 = arith.constant 1 : index
      %c0_28 = arith.constant 0 : index
      %c0_29 = arith.constant 0 : index
      %53 = vector.load %arg2[%c0_27, %c1, %c0_28, %c0_29] : memref<1x3x10x128xf32, #tpu.memory_space<vmem>>, vector<1x1x10x128xf32>
      %54 = vector.shape_cast %53 : vector<1x1x10x128xf32> to vector<10x128xf32>
      %55 = vector.broadcast %39 : vector<1x1xf32> to vector<10x128xf32>
      %56 = arith.subf %54, %55 : vector<10x128xf32>
      %57 = arith.mulf %56, %56 : vector<10x128xf32>
      %58 = arith.addf %52, %57 : vector<10x128xf32>
      %c0_30 = arith.constant 0 : index
      %c2 = arith.constant 2 : index
      %c0_31 = arith.constant 0 : index
      %c0_32 = arith.constant 0 : index
      %59 = vector.load %arg2[%c0_30, %c2, %c0_31, %c0_32] : memref<1x3x10x128xf32, #tpu.memory_space<vmem>>, vector<1x1x10x128xf32>
      %60 = vector.shape_cast %59 : vector<1x1x10x128xf32> to vector<10x128xf32>
      %61 = vector.broadcast %47 : vector<1x1xf32> to vector<10x128xf32>
      %62 = arith.subf %60, %61 : vector<10x128xf32>
      %63 = arith.mulf %62, %62 : vector<10x128xf32>
      %64 = arith.addf %58, %63 : vector<10x128xf32>
      %65 = arith.minimumf %arg6, %64 : vector<10x128xf32>
      %cst_33 = arith.constant dense<0xFF800000> : vector<10xf32>
      %66 = vector.multi_reduction <maximumf>, %65, %cst_33 [1] : vector<10x128xf32> to vector<10xf32>
      %67 = vector.shape_cast %66 : vector<10xf32> to vector<10x1xf32>
      %cst_34 = arith.constant dense<0xFF800000> : vector<1xf32>
      %68 = vector.multi_reduction <maximumf>, %67, %cst_34 [0] : vector<10x1xf32> to vector<1xf32>
      %69 = vector.shape_cast %68 : vector<1xf32> to vector<1x1xf32>
      %70 = vector.broadcast %69 : vector<1x1xf32> to vector<10x128xf32>
      %71 = arith.cmpf oeq, %65, %70 : vector<10x128xf32>
      %c1280_i32_35 = arith.constant 1280 : i32
      %72 = vector.broadcast %c1280_i32_35 : i32 to vector<10x128xi32>
      %73 = arith.select %71, %4, %72 : vector<10x128xi1>, vector<10x128xi32>
      %cst_36 = arith.constant dense<2147483647> : vector<10xi32>
      %74 = vector.multi_reduction <minsi>, %73, %cst_36 [1] : vector<10x128xi32> to vector<10xi32>
      %75 = vector.shape_cast %74 : vector<10xi32> to vector<10x1xi32>
      %cst_37 = arith.constant dense<2147483647> : vector<1xi32>
      %76 = vector.multi_reduction <minsi>, %75, %cst_37 [0] : vector<10x1xi32> to vector<1xi32>
      %77 = vector.shape_cast %76 : vector<1xi32> to vector<1x1xi32>
      %78 = vector.extract %77[0, 0] : i32 from vector<1x1xi32>
      scf.yield %78, %65 : i32, vector<10x128xf32>
    }
    %c8_i32_1 = arith.constant 8 : i32
    return
  }
  func.func @transform_0(%arg0: i32, %arg1: memref<1xi32, #tpu.memory_space<smem>>) -> (i32, i32, i32, i32) {
    %c0_i32 = arith.constant 0 : i32
    %c0_i32_0 = arith.constant 0 : i32
    %c0_i32_1 = arith.constant 0 : i32
    %c0_i32_2 = arith.constant 0 : i32
    return %arg0, %c0_i32, %c0_i32_0, %c0_i32_1 : i32, i32, i32, i32
  }
  func.func @transform_1(%arg0: i32, %arg1: memref<1xi32, #tpu.memory_space<smem>>) -> (i32, i32, i32) {
    %c0_i32 = arith.constant 0 : i32
    %c0_i32_0 = arith.constant 0 : i32
    %c0_i32_1 = arith.constant 0 : i32
    return %arg0, %c0_i32, %c0_i32_0 : i32, i32, i32
  }
}

module attributes {stable_mosaic.version = 11 : i64} {
  func.func @_fps_kernel(%arg0: i32, %arg1: memref<2xi32, #tpu.memory_space<smem>>, %arg2: memref<1x3x1x128xf32, #tpu.memory_space<vmem>>, %arg3: memref<1x32x1xi32, #tpu.memory_space<vmem>>) attributes {dimension_semantics = [#tpu.dimension_semantics<parallel>], iteration_bounds = array<i64: 2>, scalar_prefetch = 1 : i64, scratch_operands = 0 : i64, tpu.core_type = #tpu.core_type<tc>, window_params = [{transform_indices = @transform_0, window_bounds = array<i64: 1, 3, 1, 128>}, {transform_indices = @transform_1, window_bounds = array<i64: 1, 32, 1>}]} {
    %0 = tpu.iota {dimensions = array<i32: 0>} : vector<1x128xi32>
    %c128_i32 = arith.constant 128 : i32
    %1 = vector.broadcast %c128_i32 : i32 to vector<1x128xi32>
    %2 = arith.muli %0, %1 : vector<1x128xi32>
    %3 = tpu.iota {dimensions = array<i32: 1>} : vector<1x128xi32>
    %4 = arith.addi %2, %3 : vector<1x128xi32>
    %c128_i32_0 = arith.constant 128 : i32
    %5 = vector.broadcast %c128_i32_0 : i32 to vector<1x128xi32>
    %6 = arith.cmpi slt, %4, %5 : vector<1x128xi32>
    %cst = arith.constant 0x7F800000 : f32
    %cst_1 = arith.constant 0xFF800000 : f32
    %7 = vector.broadcast %cst : f32 to vector<1x128xf32>
    %8 = vector.broadcast %cst_1 : f32 to vector<1x128xf32>
    %9 = arith.select %6, %7, %8 : vector<1x128xi1>, vector<1x128xf32>
    %10 = arith.index_cast %arg0 : i32 to index
    %11 = memref.load %arg1[%10] : memref<2xi32, #tpu.memory_space<smem>>
    %12 = vector.broadcast %11 : i32 to vector<1x1xi32>
    %c0_i32 = arith.constant 0 : i32
    %c32_i32 = arith.constant 32 : i32
    %13 = arith.addi %c0_i32, %c32_i32 : i32
    %c1_i32 = arith.constant 1 : i32
    %14:2 = scf.for %arg4 = %c0_i32 to %13 step %c1_i32 iter_args(%arg5 = %12, %arg6 = %9) -> (vector<1x1xi32>, vector<1x128xf32>)  : i32 {
      %c0 = arith.constant 0 : index
      %15 = arith.index_cast %arg4 : i32 to index
      %c0_3 = arith.constant 0 : index
      %16 = vector.load %arg3[%c0, %15, %c0_3] : memref<1x32x1xi32, #tpu.memory_space<vmem>>, vector<1x1x1xi32>
      %17 = vector.shape_cast %16 : vector<1x1x1xi32> to vector<1x1xi32>
      %18 = vector.shape_cast %arg5 : vector<1x1xi32> to vector<1x1x1xi32>
      tpu.vector_store %arg3[%c0, %15, %c0_3], %18 {strides = array<i32>} : memref<1x32x1xi32, #tpu.memory_space<vmem>>, vector<1x1x1xi32>,
      %19 = vector.broadcast %arg5 : vector<1x1xi32> to vector<1x128xi32>
      %20 = arith.cmpi eq, %4, %19 : vector<1x128xi32>
      %c0_4 = arith.constant 0 : index
      %c0_5 = arith.constant 0 : index
      %c0_6 = arith.constant 0 : index
      %c0_7 = arith.constant 0 : index
      %21 = vector.load %arg2[%c0_4, %c0_5, %c0_6, %c0_7] : memref<1x3x1x128xf32, #tpu.memory_space<vmem>>, vector<1x1x1x128xf32>
      %22 = vector.shape_cast %21 : vector<1x1x1x128xf32> to vector<1x128xf32>
      %cst_8 = arith.constant 0.000000e+00 : f32
      %23 = vector.broadcast %cst_8 : f32 to vector<1x128xf32>
      %24 = arith.select %20, %22, %23 : vector<1x128xi1>, vector<1x128xf32>
      %cst_9 = arith.constant dense<0.000000e+00> : vector<1xf32>
      %25 = vector.multi_reduction <add>, %24, %cst_9 [1] : vector<1x128xf32> to vector<1xf32>
      %26 = vector.shape_cast %25 : vector<1xf32> to vector<1x1xf32>
      %cst_10 = arith.constant dense<0.000000e+00> : vector<1xf32>
      %27 = vector.multi_reduction <add>, %26, %cst_10 [0] : vector<1x1xf32> to vector<1xf32>
      %28 = vector.shape_cast %27 : vector<1xf32> to vector<1x1xf32>
      %29 = vector.broadcast %28 : vector<1x1xf32> to vector<1x128xf32>
      %30 = arith.subf %22, %29 : vector<1x128xf32>
      %31 = arith.mulf %30, %30 : vector<1x128xf32>
      %c0_11 = arith.constant 0 : index
      %c1 = arith.constant 1 : index
      %c0_12 = arith.constant 0 : index
      %c0_13 = arith.constant 0 : index
      %32 = vector.load %arg2[%c0_11, %c1, %c0_12, %c0_13] : memref<1x3x1x128xf32, #tpu.memory_space<vmem>>, vector<1x1x1x128xf32>
      %33 = vector.shape_cast %32 : vector<1x1x1x128xf32> to vector<1x128xf32>
      %cst_14 = arith.constant 0.000000e+00 : f32
      %34 = vector.broadcast %cst_14 : f32 to vector<1x128xf32>
      %35 = arith.select %20, %33, %34 : vector<1x128xi1>, vector<1x128xf32>
      %cst_15 = arith.constant dense<0.000000e+00> : vector<1xf32>
      %36 = vector.multi_reduction <add>, %35, %cst_15 [1] : vector<1x128xf32> to vector<1xf32>
      %37 = vector.shape_cast %36 : vector<1xf32> to vector<1x1xf32>
      %cst_16 = arith.constant dense<0.000000e+00> : vector<1xf32>
      %38 = vector.multi_reduction <add>, %37, %cst_16 [0] : vector<1x1xf32> to vector<1xf32>
      %39 = vector.shape_cast %38 : vector<1xf32> to vector<1x1xf32>
      %40 = vector.broadcast %39 : vector<1x1xf32> to vector<1x128xf32>
      %41 = arith.subf %33, %40 : vector<1x128xf32>
      %42 = arith.mulf %41, %41 : vector<1x128xf32>
      %43 = arith.addf %31, %42 : vector<1x128xf32>
      %c0_17 = arith.constant 0 : index
      %c2 = arith.constant 2 : index
      %c0_18 = arith.constant 0 : index
      %c0_19 = arith.constant 0 : index
      %44 = vector.load %arg2[%c0_17, %c2, %c0_18, %c0_19] : memref<1x3x1x128xf32, #tpu.memory_space<vmem>>, vector<1x1x1x128xf32>
      %45 = vector.shape_cast %44 : vector<1x1x1x128xf32> to vector<1x128xf32>
      %cst_20 = arith.constant 0.000000e+00 : f32
      %46 = vector.broadcast %cst_20 : f32 to vector<1x128xf32>
      %47 = arith.select %20, %45, %46 : vector<1x128xi1>, vector<1x128xf32>
      %cst_21 = arith.constant dense<0.000000e+00> : vector<1xf32>
      %48 = vector.multi_reduction <add>, %47, %cst_21 [1] : vector<1x128xf32> to vector<1xf32>
      %49 = vector.shape_cast %48 : vector<1xf32> to vector<1x1xf32>
      %cst_22 = arith.constant dense<0.000000e+00> : vector<1xf32>
      %50 = vector.multi_reduction <add>, %49, %cst_22 [0] : vector<1x1xf32> to vector<1xf32>
      %51 = vector.shape_cast %50 : vector<1xf32> to vector<1x1xf32>
      %52 = vector.broadcast %51 : vector<1x1xf32> to vector<1x128xf32>
      %53 = arith.subf %45, %52 : vector<1x128xf32>
      %54 = arith.mulf %53, %53 : vector<1x128xf32>
      %55 = arith.addf %43, %54 : vector<1x128xf32>
      %56 = arith.minimumf %arg6, %55 : vector<1x128xf32>
      %cst_23 = arith.constant dense<0xFF800000> : vector<1xf32>
      %57 = vector.multi_reduction <maximumf>, %56, %cst_23 [1] : vector<1x128xf32> to vector<1xf32>
      %58 = vector.shape_cast %57 : vector<1xf32> to vector<1x1xf32>
      %cst_24 = arith.constant dense<0xFF800000> : vector<1xf32>
      %59 = vector.multi_reduction <maximumf>, %58, %cst_24 [0] : vector<1x1xf32> to vector<1xf32>
      %60 = vector.shape_cast %59 : vector<1xf32> to vector<1x1xf32>
      %61 = vector.broadcast %60 : vector<1x1xf32> to vector<1x128xf32>
      %62 = arith.cmpf oeq, %56, %61 : vector<1x128xf32>
      %c128_i32_25 = arith.constant 128 : i32
      %63 = vector.broadcast %c128_i32_25 : i32 to vector<1x128xi32>
      %64 = arith.select %62, %4, %63 : vector<1x128xi1>, vector<1x128xi32>
      %cst_26 = arith.constant dense<2147483647> : vector<1xi32>
      %65 = vector.multi_reduction <minsi>, %64, %cst_26 [1] : vector<1x128xi32> to vector<1xi32>
      %66 = vector.shape_cast %65 : vector<1xi32> to vector<1x1xi32>
      %cst_27 = arith.constant dense<2147483647> : vector<1xi32>
      %67 = vector.multi_reduction <minsi>, %66, %cst_27 [0] : vector<1x1xi32> to vector<1xi32>
      %68 = vector.shape_cast %67 : vector<1xi32> to vector<1x1xi32>
      scf.yield %68, %56 : vector<1x1xi32>, vector<1x128xf32>
    }
    %c32_i32_2 = arith.constant 32 : i32
    return
  }
  func.func @transform_0(%arg0: i32, %arg1: memref<2xi32, #tpu.memory_space<smem>>) -> (i32, i32, i32, i32) {
    %c0_i32 = arith.constant 0 : i32
    %c0_i32_0 = arith.constant 0 : i32
    %c0_i32_1 = arith.constant 0 : i32
    %c0_i32_2 = arith.constant 0 : i32
    return %arg0, %c0_i32, %c0_i32_0, %c0_i32_1 : i32, i32, i32, i32
  }
  func.func @transform_1(%arg0: i32, %arg1: memref<2xi32, #tpu.memory_space<smem>>) -> (i32, i32, i32) {
    %c0_i32 = arith.constant 0 : i32
    %c0_i32_0 = arith.constant 0 : i32
    %c0_i32_1 = arith.constant 0 : i32
    return %arg0, %c0_i32, %c0_i32_0 : i32, i32, i32
  }
}

</mosaic_0001>

<bundles_post_ra>
// kernel: tpu_custom_call.1
= control target key start
LH: loop header
LB: loop body
LE: loop exit
PB: predicated region body
PF: predicated region fallthrough
CT: control target
= control target key end

     0   :  { %v10_v0 = vlaneseq  ;;  %v255_v8 = vmov -inf   ;;  %s294_s11 = smov 0   ;;  %s349_s0 = inlined_call_operand.<no memory space> [shape: s32[1], index: 0, kind: input, shape index: {}]   ;;  %s350_s1 = inlined_call_operand.vmem [shape: f32[1,3,10,128], index: 1, kind: input, shape index: {}]   ;;  %s351_s2 = inlined_call_operand.vmem [shape: s32[1,8,1], index: 2, kind: output, shape index: {}]  }
   0x2   :  { %v271_v1 = vshrl.u32 %v10_v0, 7  ;;  %v273_v2 = vand.u32 127, %v10_v0 }
   0x4   :  { %v12_v3 = vadd.s32 8, %v271_v1  ;;  %v13_v4 = vmul.u32 128, %v271_v1 }
   0x6   :  { %v14_v5 = vmul.u32 128, %v12_v3  ;;  %v278_v6 = vadd.s32 %v273_v2, %v13_v4 }
   0x8   :  { %v281_v7 = vadd.s32 %v273_v2, %v14_v5  ;;  %vm19_vm0 = vcmp.lt.s32.totalorder %v278_v6, 1280 }
   0x9   :  { %v21_v9 = vsel %vm19_vm0, inf, %v255_v8  }
   0xa   :  { %vm20_vm1 = vcmp.lt.s32.totalorder %v281_v7, 1280 }
   0xb   :  { %v22_v10 = vsel %vm20_vm1, inf, %v255_v8  }
   0xc LB: > { %vm35_vm2 = vcmask 0   ;;  %s34_s14 = scalar_lea.vmem %s351_s2, %s253_s11  ;;  %s37_s15 = sshra.s32 %s249_s0, 7  ;;  %v33_v11 = vstv %s249_s0  ;;  %vm44_vm3 = vcmask 1040384   ;;  %v66_v22 = vsub.s32 0, %v271_v1  ;;  %v62_v25 = vld [vmem:[%s350_s1] sm:$0xff]  ;;  %v184_v33 = vld [vmem:[%s350_s1 + $0x10] sm:$0xff]  ;;  %s253_s11 = sphi %s294_s11, %s29_s11   ;;  %s249_s0 = sphi %s349_s0, %s189_s0   ;;  %v245_v9 = vphi %v21_v9, %v329_v9   ;;  %v241_v10 = vphi %v22_v10, %v97_v10  }
   0xd   : > { %s38_s16 = sand.u32 127, %s249_s0  ;;  %s41_s19 = scalar_lea.vmem %s350_s1, %s37_s15  ;;  %36 = vst.msk [vmem:[%s34_s14] sm:$0x1] %vm35_vm2, %v33_v11  ;;  %v63_v26 = vld [vmem:[%s350_s1 + $0x8] sm:$0x3]  ;;  %v186_v29 = vld [vmem:[%s350_s1 + $0x20] sm:$0xff] }
   0xe   : > { %v39_v12 = vstv %s38_s16  ;;  %v42_v13 = vld [vmem:[%s41_s19] sm:$0x1]  ;;  %v182_v14 = vld [vmem:[%s41_s19 + $0x10] sm:$0x1]  ;;  %v187_v30 = vld [vmem:[%s350_s1 + $0x28] sm:$0x3] }
   0xf   : > { %v183_v15 = vld [vmem:[%s41_s19 + $0x20] sm:$0x1]  ;;  %vm40_vm4 = vcmp.eq.s32.totalorder %v273_v2, %v39_v12  ;;  %v185_v34 = vld [vmem:[%s350_s1 + $0x18] sm:$0x3]  ;;  %vm100_vm5 = vcmask 1041408   ;;  %s29_s11 = sadd.s32 1, %s253_s11  }
  0x10   : > { %v43_v16 = vsel %vm40_vm4, %v42_v13, 0.0  ;;  %v51_v17 = vsel %vm40_vm4, %v182_v14, 0.0  ;;  %v58_v18 = vsel %vm40_vm4, %v183_v15, 0.0  ;;  %p26_p0 = scmp.ge.s32.totalorder %s29_s11, 8  }
  0x11   : > { %v45_v19 = vsel %vm44_vm3, %v43_v16, 0.0  ;;  %v59_v20 = vsel %vm44_vm3, %v58_v18, 0.0  ;;  %v52_v21 = vsel %vm44_vm3, %v51_v17, 0.0 }
  0x12   : > { %46 = vadd.xlane.f32.xlu0 %v45_v19  ;;  %60 = vadd.xlane.f32.xlu1 %v59_v20 }
  0x16   : > { %53 = vadd.xlane.f32.xlu0 %v52_v21 }
  0x9f   : > { %v47_v23 = vpop.xlane.xlu0 %46  ;;  %v61_v24 = vpop.xlane.xlu1 %60 }
  0xa0   : > { %v67_v27 = vrot.slane %v47_v23, %v66_v22  ;;  %v89_v28 = vrot.slane %v61_v24, %v66_v22 }
  0xa2   : > { %v68_v31 = vsub.f32 %v62_v25, %v67_v27  ;;  %v69_v32 = vsub.f32 %v63_v26, %v67_v27  ;;  %v90_v37 = vsub.f32 %v186_v29, %v89_v28  ;;  %v91_v38 = vsub.f32 %v187_v30, %v89_v28 }
  0xa3   : > { %v54_v35 = vpop.xlane.xlu0 %53 }
  0xa4   : > { %v77_v36 = vrot.slane %v54_v35, %v66_v22  ;;  %v70_v41 = vmul.f32 %v68_v31, %v68_v31  ;;  %v71_v42 = vmul.f32 %v69_v32, %v69_v32  ;;  %v92_v45 = vmul.f32 %v90_v37, %v90_v37 }
  0xa5   : > { %v93_v46 = vmul.f32 %v91_v38, %v91_v38 }
  0xa6   : > { %v78_v39 = vsub.f32 %v184_v33, %v77_v36  ;;  %v79_v40 = vsub.f32 %v185_v34, %v77_v36 }
  0xa8   : > { %v80_v43 = vmul.f32 %v78_v39, %v78_v39  ;;  %v81_v44 = vmul.f32 %v79_v40, %v79_v40 }
  0xaa   : > { %v82_v47 = vadd.f32 %v80_v43, %v70_v41  ;;  %v83_v48 = vadd.f32 %v81_v44, %v71_v42 }
  0xac   : > { %v94_v49 = vadd.f32 %v92_v45, %v82_v47  ;;  %v95_v50 = vadd.f32 %v93_v46, %v83_v48 }
  0xae   : > { %v329_v9 = vmin.f32 %v245_v9, %v94_v49   ;;  %v97_v10 = vmin.f32 %v241_v10, %v95_v50  }
  0xb0   : > { %98 = vmax.xlane.f32.xlu0 %v329_v9  ;;  %v101_v51 = vsel %vm100_vm5, %v97_v10, -inf }
  0xb1   : > { %102 = vmax.xlane.f32.xlu1 %v101_v51 }
 0x13d   : > { %v99_v53 = vpop.xlane.xlu0 %98 }
 0x13e   : > { %v103_v52 = vpop.xlane.xlu1 %102 }
 0x13f   : > { %v104_v54 = vsel %vm100_vm5, %v103_v52, -inf }
 0x140   : > { %v105_v55 = vmax.f32 %v99_v53, %v104_v54 }
 0x142   : > { %v106_v56 = vrot.slane %v105_v55, 4 }
 0x144   : > { %v107_v57 = vmax.f32 %v105_v55, %v106_v56 }
 0x146   : > { %v108_v58 = vrot.slane %v107_v57, 2 }
 0x148   : > { %v109_v59 = vmax.f32 %v107_v57, %v108_v58 }
 0x14a   : > { %v110_v60 = vrot.slane %v109_v59, 1 }
 0x14c   : > { %v111_v61 = vmax.f32 %v109_v59, %v110_v60 }
 0x14e   : > { %vm112_vm6 = vcmp.eq.f32.partialorder %v329_v9, %v111_v61  ;;  %vm113_vm7 = vcmp.eq.f32.partialorder %v97_v10, %v111_v61 }
 0x14f   : > { %v114_v62 = vsel %vm112_vm6, %v278_v6, 1280  ;;  %v115_v63 = vsel %vm113_vm7, %v281_v7, 1280 }
 0x150   : > { %v117_v0 = vshra.s32 %v114_v62, 16  ;;  %v130_v3 = vsel %vm100_vm5, %v115_v63, 2147483647  ;;  %v116_v11 = vand.u32 65535, %v114_v62 }
 0x151   : > { %v132_v4 = vshra.s32 %v130_v3, 16  ;;  %v131_v12 = vand.u32 65535, %v130_v3 }
 0x152   : > { %v119_v5 = vcvt.s32.f32 %v117_v0  ;;  %v118_v14 = vcvt.s32.f32 %v116_v11 }
 0x153   : > { %v134_v8 = vcvt.s32.f32 %v132_v4  ;;  %v133_v16 = vcvt.s32.f32 %v131_v12 }
 0x154   : > { %120 = vmin.xlane.f32.xlu0 %v119_v5 }
 0x155   : > { %135 = vmin.xlane.f32.xlu1 %v134_v8 }
 0x1e1   : > { %v121_v13 = vpop.xlane.xlu0 %120 }
 0x1e2   : > { %v136_v15 = vpop.xlane.xlu1 %135  ;;  %vm122_vm8 = vcmp.eq.f32.partialorder %v119_v5, %v121_v13  ;;  %v127_v20 = vcvt.f32.s32 %v121_v13 }
 0x1e3   : > { %v123_v17 = vsel %vm122_vm8, %v118_v14, inf  ;;  %vm137_vm9 = vcmp.eq.f32.partialorder %v134_v8, %v136_v15  ;;  %v142_v19 = vcvt.f32.s32 %v136_v15 }
 0x1e4   : > { %124 = vmin.xlane.f32.xlu0 %v123_v17  ;;  %v138_v18 = vsel %vm137_vm9, %v133_v16, inf  ;;  %v128_v26 = vshll.u32 %v127_v20, 16 }
 0x1e5   : > { %139 = vmin.xlane.f32.xlu1 %v138_v18  ;;  %v143_v24 = vshll.u32 %v142_v19, 16 }
 0x271   : > { %v125_v21 = vpop.xlane.xlu0 %124 }
 0x272   : > { %v126_v22 = vcvt.f32.s32 %v125_v21  ;;  %v140_v23 = vpop.xlane.xlu1 %139 }
 0x273   : > { %v141_v25 = vcvt.f32.s32 %v140_v23 }
 0x274   : > { %v129_v28 = vadd.s32 %v128_v26, %v126_v22 }
 0x275   : > { %v144_v27 = vadd.s32 %v143_v24, %v141_v25 }
 0x277   : > { %v145_v29 = vsel %vm100_vm5, %v144_v27, 2147483647 }
 0x278   : > { %vm146_vm10 = vcmp.lt.s32.totalorder %v129_v28, %v145_v29 }
 0x279   : > { %v147_v30 = vsel %vm146_vm10, %v129_v28, %v145_v29 }
 0x27a   : > { %v148_v31 = vrot.slane %v147_v30, 4 }
 0x27c   : > { %vm149_vm11 = vcmp.lt.s32.totalorder %v147_v30, %v148_v31 }
 0x27d   : > { %v150_v32 = vsel %vm149_vm11, %v147_v30, %v148_v31 }
 0x27e   : > { %v151_v33 = vrot.slane %v150_v32, 2 }
 0x280   : > { %vm152_vm12 = vcmp.lt.s32.totalorder %v150_v32, %v151_v33 }
 0x281   : > { %v153_v34 = vsel %vm152_vm12, %v150_v32, %v151_v33 }
 0x282   : > { %v154_v35 = vrot.slane %v153_v34, 1 }
 0x284   : > { %vm155_vm13 = vcmp.lt.s32.totalorder %v153_v34, %v154_v35 }
 0x285   : > { %v156_v36 = vsel %vm155_vm13, %v153_v34, %v154_v35 }
 0x286   : > { %188 = vpush %v156_v36 }
 0x2b1   :  { %28 = sbr.rel (!%p26_p0) target bundleno = 12 (0xc), region = 37 }
 0x2b7   : > { %s189_s0 = spop %188  }

// kernel: tpu_custom_call.1
= control target key start
LH: loop header
LB: loop body
LE: loop exit
PB: predicated region body
PF: predicated region fallthrough
CT: control target
= control target key end

     0   :  { %s645_s0 = inlined_call_operand.hbm [shape: s32[2], index: 0, kind: input, shape index: {}]   ;;  %s646_s1 = inlined_call_operand.hbm [shape: f32[2,3,1,128], index: 1, kind: input, shape index: {}]   ;;  %s647_s2 = inlined_call_operand.vmem [shape: s32[2,32,1], index: 2, kind: output, shape index: {}]  }
   0x1   :  { %s375_s11 = scalar_lea.hbm %s645_s0, 16 }
   0x2   :  { %p376_p0 = scmp.ne.s32.totalorder %s645_s0, %s375_s11  ;;  %p379_p1 = scmp.lt.u32.totalorder %s375_s11, %s645_s0 }
   0x4   :  { %p381_p2 = pnand %p379_p1, %p376_p0 }
   0x6   :  { %384 = shalt.err (!%p381_p2)  }
   0x7   :  { %s477_s16 = smov [#allocation3]  }
   0x8   :  { %8 = dma.hbm_to_smem %s645_s0, 16, %s477_s16, [#allocation2] }
   0x9   :  { %443 = dma.done.wait [#allocation2], 16 }
   0xa   :  { %444 = vsyncadd [#allocation2], 4294967280 }
   0xb   :  { %10 = sfence }
   0xc   :  { %11 = vsyncpa [#allocation5], 0 }
   0xd   :  { %13 = vsyncpa [#allocation5 + $0x1], 0  ;;  %s509_s19 = smov 0   ;;  %s511_s20 = smov 0  }
   0xe   :  { %s513_s21 = smov 0   ;;  %s515_s22 = smov 0  }
   0xf LB: > { %s528_s0 = sadd.s32 4294967295, %s463_s22   ;;  %s531_s23 = sadd.s32 1, %s463_s22   ;;  %s463_s22 = sphi %s515_s22, %s654_s22   ;;  %s459_s21 = sphi %s513_s21, %s653_s21   ;;  %s455_s20 = sphi %s511_s20, %s652_s20   ;;  %s451_s19 = sphi %s509_s19, %s651_s19  }
  0x10   : > { %s23_s24 = ssub.s32 %s463_s22, %s531_s23  ;;  %s26_s25 = sadd.s32 1, %s459_s21 }
  0x11   : > { %p24_p3 = scmp.eq.s32.totalorder %s23_s24, 0  ;;  %p33_p4 = scmp.ne.s32.totalorder %s459_s21, %s455_s20 }
  0x12   : > { %p34_p5 = scmp.eq.s32.totalorder %s463_s22, 0  ;;  %p39_p6 = scmp.ne.s32.totalorder %s455_s20, %s451_s19 }
  0x13   : > { %s541_s26 = scalar_select %p24_p3, %s459_s21, %s26_s25  }
  0x14   : > { %p35_p7 = por %p34_p5, %p33_p4  ;;  %p40_p8 = scmp.eq.s32.totalorder %s528_s0, 0 }
  0x15   : > { %p314_p9 = scmp.lt.s32.totalorder %s463_s22, 2  ;;  %s89_s28 = sand.u32 1, %s459_s21  }
  0x16   : > { %p545_p10 = por %p40_p8, %p39_p6  ;;  %s305_s29 = smul.u32 3, %s89_s28 }
  0x17   : > { %s306_s30 = smul.u32 48, %s463_s22  ;;  %p551_p11 = pnand %p314_p9, %p35_p7 }
  0x18   : > { %s93_s7 = scalar_lea.vmem [#allocation4], %s305_s29  ;;  %s563_s9 = scalar_lea.sflag [#allocation5], %s89_s28 }
  0x19   : > { %s558_s6 = scalar_lea.hbm %s646_s1, %s306_s30  ;;  %s100_s8 = sshll.u32 %s93_s7, 4  ;;  %s560_s8 = int_to_ptr.vmem [resolvable:$true] %s100_s8 }
  0x1a   : > { %s385_s10 = scalar_lea.hbm %s558_s6, 48  ;;  %p387_p0 = pneg %p551_p11 }
  0x1b   : > { %p386_p13 = scmp.ne.s32.totalorder %s558_s6, %s385_s10  ;;  %s390_s13 = scalar_lea.hbm %s646_s1, 96 }
  0x1c   : > { %p391_p3 = scmp.lt.u32.totalorder %s558_s6, %s646_s1  ;;  %p392_p4 = scmp.lt.u32.totalorder %s390_s13, %s385_s10 }
  0x1d   : > { %p388_p1 = pnand %p387_p0, %p386_p13  ;;  %p394_p6 = scmp.lt.u32.totalorder %s385_s10, %s558_s6 }
  0x1e   : > { %p393_p5 = por %p392_p4, %p391_p3 }
  0x1f   : > { %p389_p2 = pneg %p388_p1 }
  0x20   : > { %p395_p7 = por %p394_p6, %p393_p5 }
  0x22   : > { %p396_p8 = pnand %p395_p7, %p389_p2 }
  0x24   : > { %399 = shalt.err (!%p396_p8)
}
  0x25   : > { %s400_s16 = scalar_lea.vmem %s560_s8, 48  ;;  %s478_s17 = smov [#allocation4]  }
  0x26   : > { %p401_p9 = scmp.ne.s32.totalorder %s560_s8, %s400_s16  ;;  %s405_s18 = sshll.u32 %s478_s17, 4  ;;  %s406_s18 = int_to_ptr.vmem [resolvable:$false] %s405_s18 }
  0x27   : > { %s407_s19 = scalar_lea.vmem %s406_s18, 96  ;;  %p408_p12 = scmp.lt.s32.totalorder %s560_s8, %s406_s18 }
  0x28   : > { %p403_p13 = pnand %p401_p9, %p387_p0  ;;  %p409_p3 = scmp.lt.s32.totalorder %s407_s19, %s400_s16 }
  0x2a   : > { %p404_p1 = pneg %p403_p13  ;;  %p410_p4 = por %p409_p3, %p408_p12 }
  0x2c   : > { %p411_p5 = pnand %p410_p4, %p404_p1 }
  0x2e   : > { %414 = shalt.err (!%p411_p5)
}
  0x2f   : > { %s479_s24 = smov 16   ;;  %s480_s25 = smov 1  }
  0x30   : > { %313 = dma.hbm_to_vmem [thread:$0]  (!%p551_p11), %s558_s6, 48, %s560_s8, %s563_s9, %s479_s24, %s479_s24, %s480_s25  }
  0x31   : > { %p108_p0 = scmp.lt.s32.totalorder %s463_s22, 3  ;;  %p650_p2 = scmp.ge.s32.totalorder %s463_s22, 1 }
  0x33   : > { %p109_p6 = pnand %p650_p2, %p108_p0 }
  0x34   : > { %s114_s28 = sand.u32 (!%p109_p6), 1, %s455_s20  }
  0x35   : > { %112 = sbr.rel (%p109_p6) target bundleno = 670 (0x29e), region = 24  ;;  %s115_s30 = scalar_lea.sflag (!%p109_p6), [#allocation5], %s114_s28 }
  0x36   : > { %s307_s29 = smul.u32 (!%p109_p6), 3, %s114_s28 }
  0x38   : > { %s595_s4 = scalar_lea.vmem (!%p109_p6), [#allocation4], %s307_s29 }
  0x3c   : > { %446 = dma.done.wait (%p545_p10), %s115_s30, 48  }
  0x3d   : > { %448 = vsyncadd (%p545_p10), %s115_s30, 4294967248  ;;  %p137_p11 = scmp.lt.s32.totalorder %s528_s0, 1  ;;  %v142_v0 = vlaneseq  ;;  %s150_s22 = sld [smem:[#allocation3 + %s528_s0]]  ;;  %v481_v6 = vmov -inf  }
  0x3e   : > { %s612_s27 = smov 0  }
  0x3f   : > { %s656_s0 = smov (!%p137_p11, %s528_s0), 1  ;;  %v143_v1 = vshrl.u32 %v142_v0, 7  ;;  %v146_v2 = vand.u32 127, %v142_v0 }
  0x40   : > { %s304_s3 = sshll.u32 %s656_s0, 5 }
  0x41   : > { %v144_v3 = vmul.u32 128, %v143_v1  ;;  %s607_s7 = scalar_lea.vmem %s647_s2, %s304_s3 }
  0x43   : > { %v609_v4 = vadd.s32 %v146_v2, %v144_v3  ;;  %v151_v5 = vstv %s150_s22  }
  0x44   : > { %v469_v9 = vmov %v151_v5  }
  0x45   : > { %vm148_vm0 = vcmp.lt.s32.totalorder %v609_v4, 128 }
  0x46   : > { %v149_v7 = vsel %vm148_vm0, inf, %v481_v6  }
  0x47   : > { %v465_v8 = vmov %v149_v7  }
  0x48 LB: >> { %vm161_vm1 = vcmask 0   ;;  %v164_v10 = vld [vmem:[%s595_s4] sm:$0x1]  ;;  %v300_v11 = vld [vmem:[%s595_s4 + $0x1] sm:$0x1]  ;;  %vm166_vm2 = vcmask 1040384   ;;  %s160_s0 = scalar_lea.vmem %s607_s7, %s475_s27  ;;  %vm163_vm3 = vcmp.eq.s32.totalorder %v609_v4, %v471_v9  ;;  %s475_s27 = sphi %s612_s27, %s157_s27   ;;  %v471_v9 = vphi %v469_v9, %v213_v9   ;;  %v467_v8 = vphi %v465_v8, %v193_v8  }
  0x49   : >> { %v301_v12 = vld [vmem:[%s595_s4 + $0x2] sm:$0x1]  ;;  %v165_v13 = vsel %vm163_vm3, %v164_v10, 0.0  ;;  %162 = vst.msk [vmem:[%s160_s0] sm:$0x1] %vm161_vm1, %v471_v9  ;;  %v175_v14 = vsel %vm163_vm3, %v300_v11, 0.0 }
  0x4a   : >> { %v185_v15 = vsel %vm163_vm3, %v301_v12, 0.0  ;;  %v167_v16 = vsel %vm166_vm2, %v165_v13, 0.0  ;;  %v176_v18 = vsel %vm166_vm2, %v175_v14, 0.0  ;;  %s157_s27 = sadd.s32 1, %s475_s27  }
  0x4b   : >> { %v186_v17 = vsel %vm166_vm2, %v185_v15, 0.0  ;;  %168 = vadd.xlane.f32.xlu0 %v167_v16  ;;  %p154_p10 = scmp.ge.s32.totalorder %s157_s27, 32  }
  0x4c   : >> { %187 = vadd.xlane.f32.xlu1 %v186_v17 }
  0x4f   : >> { %177 = vadd.xlane.f32.xlu0 %v176_v18 }
  0xd8   : >> { %v169_v19 = vpop.xlane.xlu0 %168 }
  0xd9   : >> { %v188_v20 = vpop.xlane.xlu1 %187  ;;  %v171_v21 = vsub.f32 %v164_v10, %v169_v19 }
  0xda   : >> { %v190_v22 = vsub.f32 %v301_v12, %v188_v20 }
  0xdb   : >> { %v172_v25 = vmul.f32 %v171_v21, %v171_v21 }
  0xdc   : >> { %v178_v23 = vpop.xlane.xlu0 %177  ;;  %v191_v27 = vmul.f32 %v190_v22, %v190_v22 }
  0xdd   : >> { %v180_v24 = vsub.f32 %v300_v11, %v178_v23 }
  0xdf   : >> { %v181_v26 = vmul.f32 %v180_v24, %v180_v24 }
  0xe1   : >> { %v182_v28 = vadd.f32 %v181_v26, %v172_v25 }
  0xe3   : >> { %v192_v29 = vadd.f32 %v191_v27, %v182_v28 }
  0xe5   : >> { %v193_v8 = vmin.f32 %v467_v8, %v192_v29  }
  0xe7   : >> { %v194_v30 = vsel %vm166_vm2, %v193_v8, -inf }
  0xe8   : >> { %195 = vmax.xlane.f32.xlu1 %v194_v30 }
 0x175   : >> { %v196_v31 = vpop.xlane.xlu1 %195 }
 0x176   : >> { %vm197_vm4 = vcmp.eq.f32.partialorder %v193_v8, %v196_v31 }
 0x177   : >> { %v198_v32 = vsel %vm197_vm4, %v609_v4, 128 }
 0x178   : >> { %v199_v33 = vsel %vm166_vm2, %v198_v32, 2147483647 }
 0x179   : >> { %v201_v34 = vshra.s32 %v199_v33, 16  ;;  %v200_v36 = vand.u32 65535, %v199_v33 }
 0x17b   : >> { %v203_v35 = vcvt.s32.f32 %v201_v34  ;;  %v202_v38 = vcvt.s32.f32 %v200_v36 }
 0x17d   : >> { %204 = vmin.xlane.f32.xlu0 %v203_v35 }
 0x20a   : >> { %v205_v37 = vpop.xlane.xlu0 %204 }
 0x20b   : >> { %vm206_vm5 = vcmp.eq.f32.partialorder %v203_v35, %v205_v37  ;;  %v211_v40 = vcvt.f32.s32 %v205_v37 }
 0x20c   : >> { %v207_v39 = vsel %vm206_vm5, %v202_v38, inf }
 0x20d   : >> { %208 = vmin.xlane.f32.xlu1 %v207_v39  ;;  %v212_v42 = vshll.u32 %v211_v40, 16 }
 0x297   : > { %156 = sbr.rel (!%p154_p10) target bundleno = 72 (0x48), region = 74 }
 0x29a   : >> { %v209_v41 = vpop.xlane.xlu1 %208 }
 0x29b   : >> { %v210_v43 = vcvt.f32.s32 %v209_v41 }
 0x29d   : >> { %v213_v9 = vadd.s32 %v212_v42, %v210_v43  }
 0x29e PF: > { %p16_p12 = scmp.ge.s32.totalorder %s531_s23, 4   ;;  %s651_s19 = smov %s455_s20 }
 0x29f   : > { %s652_s20 = smov %s459_s21  ;;  %s653_s21 = smov %s541_s26 }
 0x2a0   : > { %s654_s22 = smov %s531_s23  ;;  %18 = sbr.rel (!%p16_p12) target bundleno = 15 (0xf), region = 85 }
 0x2a7   :  { %235 = vsyncpa [#allocation5], 1 }
 0x2a8   :  { %237 = vsyncpa [#allocation5 + $0x1], 1 }

</bundles_post_ra>
